<compile_context>
chip_gen: v5e
topology: v5e:2x2
jax: 0.10.0
libtpu: 0.0.40
codegen_flags: <defaults>
</compile_context>

<pallas_src>
import jax
import jax.numpy as jnp
from jax.experimental import pallas as pl
from jax.experimental.pallas import tpu as pltpu


def _make_kernel(compute_dtype):
    def kernel(wb_ref, x_ref, o_ref):
        # wb_ref lives in SMEM: wb_ref[0] = weight, wb_ref[1] = bias.
        w = wb_ref[0].astype(compute_dtype)
        b = wb_ref[1].astype(compute_dtype)
        # One VPU multiply-add per vreg, fully hidden under the DMA pipeline.
        o_ref[...] = (x_ref[...].astype(compute_dtype) * w + b).astype(o_ref.dtype)
    return kernel


def bias_correction(x, weight, bias, *, lane_width=1024,
                    target_tile_bytes=4 << 20, donate_x=False):
    """Pallas equivalent of BiasCorrectionLayer.forward: weight * x + bias.

    x:      arbitrary-shaped float array (logits)
    weight: scalar (the (1,1) Linear weight)
    bias:   scalar (the (1,)  Linear bias)
    returns weight * x + bias, same shape/dtype as x.
    """
    orig_shape = x.shape
    orig_dtype = x.dtype
    total = int(x.size)
    if total == 0:                      # degenerate input guard
        return x

    itemsize = x.dtype.itemsize
    wb = jnp.stack([jnp.asarray(weight, jnp.float32),
                    jnp.asarray(bias, jnp.float32)])

    # bf16 computes natively; everything else in f32 (cast back at the store).
    compute_dtype = orig_dtype if orig_dtype == jnp.bfloat16 else jnp.float32
    kernel = _make_kernel(compute_dtype)

    made_copy = False
    if (x.ndim >= 2 and orig_shape[-1] % 128 == 0
            and 8 * orig_shape[-1] * itemsize <= target_tile_bytes):
        # ---- Fast path: last dim already lane-aligned; tile original layout.
        L = int(orig_shape[-1])
        slab = x if x.ndim == 2 else x.reshape(-1, L)   # free collapse
        rows = slab.shape[0]
    else:
        # ---- General path: lane-dense (rows, L) slab; pad only if ragged.
        L = int(lane_width)
        assert L % 128 == 0, "lane_width must be a multiple of 128"
        rows = pl.cdiv(total, L)
        flat = x.reshape(-1)
        if total != rows * L:
            flat = jnp.pad(flat, (0, rows * L - total))
            made_copy = True
        slab = flat.reshape(rows, L)

    # ---- Row tiling: ~target_tile_bytes per tile, multiple of 8; keep the
    # grid at >= 2 steps when rows allow it so both v7x TCs stream data.
    if rows <= 8:
        tile_rows = rows                 # full extent; (8,128) rule satisfied
    else:
        target_rows = max(8, (target_tile_bytes // (itemsize * L)) // 8 * 8)
        tile_rows = min(target_rows, pl.cdiv(rows, 8) * 8)
        if pl.cdiv(rows, tile_rows) == 1 and rows >= 16:
            tile_rows = pl.cdiv(pl.cdiv(rows, 2), 8) * 8
    grid = (pl.cdiv(rows, tile_rows),)

    # Alias input slab -> output when the slab is a wrapper-local temp (pad
    # path) or the caller explicitly donates x: halves HBM footprint.
    alias = {1: 0} if (donate_x or made_copy) else {}

    out_slab = pl.pallas_call(
        kernel,
        out_shape=jax.ShapeDtypeStruct((rows, L), orig_dtype),
        grid=grid,
        in_specs=[
            pl.BlockSpec(memory_space=pltpu.SMEM),            # [w, b] scalars
            pl.BlockSpec((tile_rows, L), lambda i: (i, 0)),   # x tile
        ],
        out_specs=pl.BlockSpec((tile_rows, L), lambda i: (i, 0)),
        compiler_params=pltpu.CompilerParams(
            dimension_semantics=("parallel",),
            vmem_limit_bytes=32 << 20,
        ),
        cost_estimate=pl.CostEstimate(
            flops=2 * rows * L,
            transcendentals=0,
            bytes_accessed=2 * rows * L * itemsize,
        ),
        input_output_aliases=alias,
    )(wb, slab)

    if made_copy:
        return out_slab.reshape(-1)[:total].reshape(orig_shape)
    return out_slab.reshape(orig_shape)


if __name__ == "__main__":
    key = jax.random.PRNGKey(0)

    # 1) Small, non-128-aligned logits (general / pad path), params matching
    #    the module __init__: weight=1.0, bias=0.0.
    x = jax.random.normal(key, (8, 20), dtype=jnp.float32)
    w0, b0 = jnp.float32(1.0), jnp.float32(0.0)
    out0 = jax.block_until_ready(bias_correction(x, w0, b0))
    assert out0.shape == x.shape and out0.dtype == x.dtype
    assert jnp.allclose(out0, w0 * x + b0, atol=1e-6, rtol=1e-6)

    # 2) Non-trivial (as-if-trained) parameters, same input.
    w1, b1 = jnp.float32(1.25), jnp.float32(-0.5)
    out1 = jax.block_until_ready(bias_correction(x, w1, b1))
    assert jnp.allclose(out1, w1 * x + b1, atol=1e-6, rtol=1e-6)

    # 3) Lane-aligned fast path (no wrapper copies), ragged last row-tile.
    x2 = jax.random.normal(jax.random.PRNGKey(1), (24, 256), dtype=jnp.float32)
    out2 = jax.block_until_ready(bias_correction(x2, w1, b1))
    assert jnp.allclose(out2, w1 * x2 + b1, atol=1e-6, rtol=1e-6)

    # 4) bf16 native-compute path.
    x3 = jax.random.normal(jax.random.PRNGKey(2), (16, 128), dtype=jnp.bfloat16)
    out3 = jax.block_until_ready(bias_correction(x3, w1, b1))
    assert out3.shape == x3.shape and out3.dtype == jnp.bfloat16
    ref3 = w1 * x3.astype(jnp.float32) + b1
    assert jnp.allclose(out3.astype(jnp.float32), ref3, atol=5e-2, rtol=5e-2)

    print("KERNEL_OK")
</pallas_src>

<mosaic_0001>
module attributes {stable_mosaic.version = 11 : i64} {
  func.func @kernel(%arg0: i32, %arg1: memref<2xf32, #tpu.memory_space<smem>>, %arg2: memref<1x1024xf32, #tpu.memory_space<vmem>>, %arg3: memref<1x1024xf32, #tpu.memory_space<vmem>>) attributes {dimension_semantics = [#tpu.dimension_semantics<parallel>], iteration_bounds = array<i64: 1>, scalar_prefetch = 0 : i64, scratch_operands = 0 : i64, tpu.core_type = #tpu.core_type<tc>, window_params = [{transform_indices = @transform_0, window_bounds = array<i64: 2>}, {transform_indices = @transform_1, window_bounds = array<i64: 1, 1024>}, {transform_indices = @transform_2, window_bounds = array<i64: 1, 1024>}]} {
    %c0 = arith.constant 0 : index
    %0 = memref.load %arg1[%c0] : memref<2xf32, #tpu.memory_space<smem>>
    %c1 = arith.constant 1 : index
    %1 = memref.load %arg1[%c1] : memref<2xf32, #tpu.memory_space<smem>>
    %c0_0 = arith.constant 0 : index
    %c0_1 = arith.constant 0 : index
    %2 = vector.load %arg2[%c0_0, %c0_1] : memref<1x1024xf32, #tpu.memory_space<vmem>>, vector<1x1024xf32>
    %3 = vector.broadcast %0 : f32 to vector<1x1024xf32>
    %4 = arith.mulf %2, %3 : vector<1x1024xf32>
    %5 = vector.broadcast %1 : f32 to vector<1x1024xf32>
    %6 = arith.addf %4, %5 : vector<1x1024xf32>
    %c0_2 = arith.constant 0 : index
    %c0_3 = arith.constant 0 : index
    %7 = vector.load %arg3[%c0_2, %c0_3] : memref<1x1024xf32, #tpu.memory_space<vmem>>, vector<1x1024xf32>
    tpu.vector_store %arg3[%c0_2, %c0_3], %6 {strides = array<i32>} : memref<1x1024xf32, #tpu.memory_space<vmem>>, vector<1x1024xf32>,
    return
  }
  func.func @transform_0(%arg0: i32) -> i32 {
    %c0_i32 = arith.constant 0 : i32
    %c0_i32_0 = arith.constant 0 : i32
    return %c0_i32 : i32
  }
  func.func @transform_1(%arg0: i32) -> (i32, i32) {
    %c0_i32 = arith.constant 0 : i32
    %c0_i32_0 = arith.constant 0 : i32
    return %arg0, %c0_i32 : i32, i32
  }
  func.func @transform_2(%arg0: i32) -> (i32, i32) {
    %c0_i32 = arith.constant 0 : i32
    %c0_i32_0 = arith.constant 0 : i32
    return %arg0, %c0_i32 : i32, i32
  }
}

</mosaic_0001>

<bundles_post_ra>
// kernel: tpu_custom_call.1
= control target key start
LH: loop header
LB: loop body
LE: loop exit
PB: predicated region body
PF: predicated region fallthrough
CT: control target
= control target key end

     0   :  { %7 = vsyncpa [#allocation5], 0  ;;  %s162_s0 = inlined_call_operand.vmem [shape: f32[2], index: 0, kind: input, shape index: {}]   ;;  %s163_s1 = inlined_call_operand.hbm [shape: f32[1,1024], index: 1, kind: input, shape index: {}, may-alias: {1,2}]   ;;  %s164_s2 = inlined_call_operand.hbm [shape: f32[1,1024], index: 2, kind: output, shape index: {}, may-alias: {1,2}]  }
   0x1   :  { %8 = vsyncpa [#allocation3], 0 }
   0x2   :  { %9 = vsyncpa [#allocation4], 0  ;;  %s15_s11 = sshll.u32 %s162_s0, 4  ;;  %s24_s14 = sshll.u32 %s163_s1, 4  ;;  %s16_s11 = int_to_ptr.vmem [resolvable:$true] %s15_s11  ;;  %s25_s14 = int_to_ptr.hbm [resolvable:$true] %s24_s14 }
   0x3   :  { %s135_s15 = smov [#allocation2]   ;;  %s136_s16 = smov [#allocation6]  }
   0x4   :  { %18 = dma.vmem_to_smem %s16_s11, 16, %s135_s15, [#allocation5]  }
   0x5   :  { %s26_s17 = sshll.u32 %s136_s16, 4  ;;  %s27_s17 = int_to_ptr.vmem [resolvable:$true] %s26_s17 }
   0x6   :  { %29 = dma.hbm_to_vmem [thread:$0]  %s25_s14, 128, %s27_s17, [#allocation3]  }
   0x7   :  { %129 = dma.done.wait [#allocation5], 16  }
   0x8   :  { %130 = vsyncadd [#allocation5], 4294967280 }
   0x9   :  { %131 = dma.done.wait [#allocation3], 128  }
   0xa   :  { %132 = vsyncadd [#allocation3], 4294967168 }
   0xb   :  { %38 = sfence }
   0xc   :  { %s39_s18 = sld [smem:[#allocation2]]  ;;  %v41_v0 = vld [vmem:[#allocation6] sm:$0xff]  ;;  %s137_s0 = smov [#allocation7]  }
   0xd   :  { %s65_s19 = sld [smem:[#allocation2 + $0x1]]  ;;  %s52_s20 = sshll.u32 %s137_s0, 4  ;;  %s53_s20 = int_to_ptr.vmem [resolvable:$true] %s52_s20 }
   0xe   :  { %s54_s22 = sshll.u32 %s164_s2, 4  ;;  %s55_s22 = int_to_ptr.hbm [resolvable:$true] %s54_s22 }
  0x12   :  { %v42_v1 = vstv %s39_s18 }
  0x13   :  { %v43_v2 = vmul.f32 %v42_v1, %v41_v0  ;;  %v44_v3 = vstv %s65_s19 }
  0x15   :  { %v45_v4 = vadd.f32 %v44_v3, %v43_v2 }
  0x17   :  { %46 = vst [vmem:[#allocation7] sm:$0xff] %v45_v4 }
  0x18   :  { %57 = dma.vmem_to_hbm [thread:$0]  %s53_s20, 128, %s55_s22, [#allocation4]  }
  0x19   :  { %133 = dma.done.wait [#allocation4], 128  }
  0x1a   :  { %134 = vsyncadd [#allocation4], 4294967168 }
  0x1b   :  { %62 = vsyncpa [#allocation3], 1 }
  0x1c   :  { %63 = vsyncpa [#allocation4], 1 }
  0x1d   :  { %64 = vsyncpa [#allocation5], 1 }

</bundles_post_ra>
